<compile_context>
chip_gen: v6e
topology: v6e:2x2x1
jax: 0.10.0
libtpu: 0.0.40
codegen_flags: <defaults>
</compile_context>

<pallas_src>
import functools

import jax
import jax.numpy as jnp
from jax.experimental import pallas as pl
from jax.experimental.pallas import tpu as pltpu


def _ceil_to(x, m):
    return ((x + m - 1) // m) * m


def _lane_group_reduce(val, op, group, width):
    """Reduce over lane-groups of size `group` inside a (T, width) array.

    Lane l belongs to group (l mod group); the result has the group reduction
    broadcast back to every member lane.  Uses log-step cyclic rolls when the
    number of groups is a power of two, else a linear sweep.
    """
    n_groups = width // group
    if n_groups <= 1:
        return val
    if (n_groups & (n_groups - 1)) == 0:          # power of two -> log reduction
        shift = group
        while shift < width:
            val = op(val, pltpu.roll(val, shift, axis=1))
            shift *= 2
        return val
    acc = val
    for k in range(1, n_groups):
        acc = op(acc, pltpu.roll(val, k * group, axis=1))
    return acc


# ---------------------------------------------------------------------------
# Fused 3-head EmbeddingClassifier kernel.
#
# Kernel-side layout (N on sublanes, features on lanes):
#   x_ref  : (T, V*E)        natural contiguous tile of x.reshape(N, V*E)
#   wa_ref : (V*E, H*V*E)    block-diagonal attention weight (built in wrapper)
#                            wa_ref[v*E+i, h*V*E+v*E+o] = Wa_h[o, i]
#   w2_ref : (H*V*E, H)      block-diagonal head projection
#                            w2_ref[h*V*E+v*E+e, h]     = w2_h[e]
#   out_ref: (T, H)
#
# Per tile:
#   a      = x @ Wa_big                      one MXU call, K = V*E = 128
#   per head h (128-lane aligned slice of a, lanes ordered (v, e)):
#     softmax over v   -> cyclic-roll group max / sum (exact division)
#     z_h   = attn_h * x                     elementwise (same (v, e) lane order)
#   out    = concat_h(z_h) @ W2_big          one MXU call -> (T, H)
# ---------------------------------------------------------------------------
def _fused_classifier_kernel(x_ref, wa_ref, w2_ref, out_ref, *,
                             n_heads, n_verts, e_dim):
    ve = n_verts * e_dim
    xf = x_ref[...].astype(jnp.float32)                     # (T, V*E)

    # All heads' / all vertices' attention logits in one MXU call.
    a = jnp.dot(xf, wa_ref[...], preferred_element_type=jnp.float32)  # (T, H*V*E)

    z_parts = []
    for h in range(n_heads):
        ah = a[:, h * ve:(h + 1) * ve]                       # (T, V*E), 128-aligned
        m = _lane_group_reduce(ah, jnp.maximum, e_dim, ve)   # max over vertices
        p = jnp.exp(ah - m)
        denom = _lane_group_reduce(p, jnp.add, e_dim, ve)    # sum over vertices
        attn = p / denom                                     # exact (no approx recip)
        z_parts.append(attn * xf)                            # (T, V*E)

    z = jnp.concatenate(z_parts, axis=1)                     # (T, H*V*E)
    out_ref[...] = jnp.dot(z, w2_ref[...],
                           preferred_element_type=jnp.float32)  # (T, H)


def classify_embeddings_pallas(x, wa_stack, w2_stack, *,
                               tile_n=1024, stream_dtype=None):
    """x: (B, S, V, E).  wa_stack: (H, E, E) torch-Linear weights (out, in).
    w2_stack: (H, 1, E).  Returns H arrays of shape (B, S)."""
    B, S, V, E = x.shape
    H = wa_stack.shape[0]
    N = B * S
    VE = V * E

    # Natural contiguous layout: free reshape, no HBM round-trip.
    x2 = x.reshape(N, VE)
    if stream_dtype is not None and x2.dtype != stream_dtype:
        x2 = x2.astype(stream_dtype)      # optional bf16 streaming (off by default)

    # Tile over N (sublane axis): multiple of 8, capped at the problem size;
    # keep >= 2 tiles when there is enough work so v7x megacore can split.
    tile = min(max(int(tile_n), 8), _ceil_to(N, 8))
    tile = _ceil_to(tile, 8)
    if N > 1024 and pl.cdiv(N, tile) < 2:
        tile = _ceil_to(pl.cdiv(N, 2), 8)
    n_tiles = pl.cdiv(N, tile)

    # Tiny weights are pre-assembled (block-diagonal) in the wrapper.
    wa_f = wa_stack.astype(jnp.float32)                       # (H, E_out, E_in)
    w2_f = w2_stack.reshape(H, E).astype(jnp.float32)         # (H, E)
    eye_v = jnp.eye(V, dtype=jnp.float32)
    eye_h = jnp.eye(H, dtype=jnp.float32)
    # W_attn[v*E+i, h*V*E+u*E+o] = delta(v,u) * wa[h, o, i]
    w_attn = jnp.einsum("vu,hoi->vihuo", eye_v, wa_f).reshape(VE, H * VE)
    # W2_big[h*V*E+v*E+e, g] = delta(h,g) * w2[h, e]
    w2_big = jnp.einsum("hg,he,v->hveg", eye_h, w2_f,
                        jnp.ones((V,), jnp.float32)).reshape(H * VE, H)

    kernel = functools.partial(_fused_classifier_kernel,
                               n_heads=H, n_verts=V, e_dim=E)

    out = pl.pallas_call(
        kernel,
        out_shape=jax.ShapeDtypeStruct((N, H), jnp.float32),
        grid_spec=pltpu.PrefetchScalarGridSpec(
            num_scalar_prefetch=0,
            grid=(n_tiles,),
            in_specs=[
                pl.BlockSpec((tile, VE), lambda i: (i, 0)),       # x tile (streamed)
                pl.BlockSpec((VE, H * VE), lambda i: (0, 0)),     # Wa_big (resident)
                pl.BlockSpec((H * VE, H), lambda i: (0, 0)),      # W2_big (resident)
            ],
            out_specs=pl.BlockSpec((tile, H), lambda i: (i, 0)),
        ),
        compiler_params=pltpu.CompilerParams(
            dimension_semantics=("parallel",),
            vmem_limit_bytes=48 * 1024 * 1024),
    )(x2, w_attn, w2_big)

    out = out[:N]                                             # (N, H)
    return (out[:, 0].reshape(B, S),
            out[:, 1].reshape(B, S),
            out[:, 2].reshape(B, S))


# ---------------------------------------------------------------------------
# VertTransformer.forward
# ---------------------------------------------------------------------------
def vert_transformer_forward(x, pos_encodings, seq_encodings, params,
                             use_transformer=True, use_seq_encodings=False,
                             use_resnet_encoder=False):
    """x: (B, S, V, E) already-embedded vertex features (see TODOs)."""
    # TODO(synk): VertTransformerEncoder.embed_verts is not defined in the
    # reference source; the embedding stage is treated as identity (inputs are
    # assumed to already carry embedding_dim features).
    # TODO(synk): VertTransformerLayers is not defined in the reference source;
    # the transformer stage (and pos/seq encodings) is treated as identity.
    del pos_encodings, seq_encodings, use_transformer, use_seq_encodings

    if use_resnet_encoder:
        x = jnp.mean(x, axis=2, keepdims=True)

    return classify_embeddings_pallas(x, params["wa"], params["w2"])


# ---------------------------------------------------------------------------
# Pure-JAX reference (mirrors the PyTorch EmbeddingClassifier math exactly).
# ---------------------------------------------------------------------------
def _classify_ref(x, wa_stack, w2_stack):
    outs = []
    for h in range(3):
        a = jnp.einsum("bsve,fe->bsvf", x, wa_stack[h])
        attn = jax.nn.softmax(a, axis=2)
        pooled = jnp.sum(attn * x, axis=2, keepdims=True)      # (B,S,1,E)
        o = jnp.einsum("bsie,oe->bsio", pooled, w2_stack[h])   # (B,S,1,1)
        outs.append(o[:, :, 0, 0])                              # squeeze(2).squeeze(-1)
    return tuple(outs)


# ---------------------------------------------------------------------------
# Deterministic parameter init (nn.Linear-style uniform, bias=False).
# ---------------------------------------------------------------------------
def init_params(key, embedding_dim):
    bound = 1.0 / (embedding_dim ** 0.5)
    k1, k2 = jax.random.split(key)
    wa = jax.random.uniform(k1, (3, embedding_dim, embedding_dim),
                            jnp.float32, -bound, bound)
    w2 = jax.random.uniform(k2, (3, 1, embedding_dim),
                            jnp.float32, -bound, bound)
    return {"wa": wa, "w2": w2}


if __name__ == "__main__":
    B, S, V, E = 2, 8, 4, 32   # batch, sequence, vertices-per-seq, embedding_dim

    key = jax.random.PRNGKey(0)
    kx, kp, kpe, kse = jax.random.split(key, 4)

    x = jax.random.normal(kx, (B, S, V, E), jnp.float32)
    pos_encodings = jax.random.normal(kpe, (B, S, V, E), jnp.float32)
    seq_encodings = jax.random.normal(kse, (B, S, V, E), jnp.float32)
    params = init_params(kp, E)

    fwd = jax.jit(functools.partial(vert_transformer_forward, params=params))
    x_met, x_col, x_mscc = fwd(x, pos_encodings, seq_encodings)
    jax.block_until_ready((x_met, x_col, x_mscc))

    # Verify against the pure-JAX reference of the defined math.  Exact
    # softmax division (no approximate reciprocal) -> tight tolerance.
    r_met, r_col, r_mscc = _classify_ref(x, params["wa"], params["w2"])
    assert x_met.shape == (B, S) and x_col.shape == (B, S) and x_mscc.shape == (B, S)
    assert jnp.allclose(x_met, r_met, atol=1e-4, rtol=1e-4)
    assert jnp.allclose(x_col, r_col, atol=1e-4, rtol=1e-4)
    assert jnp.allclose(x_mscc, r_mscc, atol=1e-4, rtol=1e-4)

    print("KERNEL_OK")
</pallas_src>

<mosaic_0001>
module attributes {stable_mosaic.version = 11 : i64} {
  func.func @_fused_classifier_kernel(%arg0: i32, %arg1: memref<16x128xf32, #tpu.memory_space<vmem>>, %arg2: memref<128x384xf32, #tpu.memory_space<vmem>>, %arg3: memref<384x3xf32, #tpu.memory_space<vmem>>, %arg4: memref<16x3xf32, #tpu.memory_space<vmem>>) attributes {dimension_semantics = [#tpu.dimension_semantics<parallel>], iteration_bounds = array<i64: 1>, scalar_prefetch = 0 : i64, scratch_operands = 0 : i64, tpu.core_type = #tpu.core_type<tc>, window_params = [{transform_indices = @transform_0, window_bounds = array<i64: 16, 128>}, {pipeline_mode = #tpu.pipeline_mode<synchronous>, transform_indices = @transform_1, window_bounds = array<i64: 128, 384>}, {pipeline_mode = #tpu.pipeline_mode<synchronous>, transform_indices = @transform_2, window_bounds = array<i64: 384, 3>}, {transform_indices = @transform_3, window_bounds = array<i64: 16, 3>}]} {
    %c0 = arith.constant 0 : index
    %c0_0 = arith.constant 0 : index
    %0 = vector.load %arg1[%c0, %c0_0] : memref<16x128xf32, #tpu.memory_space<vmem>>, vector<16x128xf32>
    %c0_1 = arith.constant 0 : index
    %c0_2 = arith.constant 0 : index
    %1 = vector.load %arg2[%c0_1, %c0_2] : memref<128x384xf32, #tpu.memory_space<vmem>>, vector<128x384xf32>
    %cst = arith.constant dense<0.000000e+00> : vector<16x384xf32>
    %2 = tpu.matmul %0, %1, %cst {dimension_numbers = #tpu.dot_dimension_numbers<[1], [0], [0], [1], [0, 0, 1, 1], [], []>} : vector<16x128xf32>, vector<128x384xf32>, vector<16x384xf32> -> vector<16x384xf32>
    %3 = vector.extract_strided_slice %2 {offsets = [0, 0], sizes = [16, 128], strides = [1, 1]} : vector<16x384xf32> to vector<16x128xf32>
    %c32_i32 = arith.constant 32 : i32
    %4 = tpu.dynamic_rotate %3 by %c32_i32 dim 1 : vector<16x128xf32>, i32 -> vector<16x128xf32>
    %5 = arith.maximumf %3, %4 : vector<16x128xf32>
    %c64_i32 = arith.constant 64 : i32
    %6 = tpu.dynamic_rotate %5 by %c64_i32 dim 1 : vector<16x128xf32>, i32 -> vector<16x128xf32>
    %7 = arith.maximumf %5, %6 : vector<16x128xf32>
    %8 = arith.subf %3, %7 : vector<16x128xf32>
    %9 = math.exp %8 : vector<16x128xf32>
    %c32_i32_3 = arith.constant 32 : i32
    %10 = tpu.dynamic_rotate %9 by %c32_i32_3 dim 1 : vector<16x128xf32>, i32 -> vector<16x128xf32>
    %11 = arith.addf %9, %10 : vector<16x128xf32>
    %c64_i32_4 = arith.constant 64 : i32
    %12 = tpu.dynamic_rotate %11 by %c64_i32_4 dim 1 : vector<16x128xf32>, i32 -> vector<16x128xf32>
    %13 = arith.addf %11, %12 : vector<16x128xf32>
    %14 = arith.divf %9, %13 : vector<16x128xf32>
    %15 = arith.mulf %14, %0 : vector<16x128xf32>
    %16 = vector.extract_strided_slice %2 {offsets = [0, 128], sizes = [16, 128], strides = [1, 1]} : vector<16x384xf32> to vector<16x128xf32>
    %c32_i32_5 = arith.constant 32 : i32
    %17 = tpu.dynamic_rotate %16 by %c32_i32_5 dim 1 : vector<16x128xf32>, i32 -> vector<16x128xf32>
    %18 = arith.maximumf %16, %17 : vector<16x128xf32>
    %c64_i32_6 = arith.constant 64 : i32
    %19 = tpu.dynamic_rotate %18 by %c64_i32_6 dim 1 : vector<16x128xf32>, i32 -> vector<16x128xf32>
    %20 = arith.maximumf %18, %19 : vector<16x128xf32>
    %21 = arith.subf %16, %20 : vector<16x128xf32>
    %22 = math.exp %21 : vector<16x128xf32>
    %c32_i32_7 = arith.constant 32 : i32
    %23 = tpu.dynamic_rotate %22 by %c32_i32_7 dim 1 : vector<16x128xf32>, i32 -> vector<16x128xf32>
    %24 = arith.addf %22, %23 : vector<16x128xf32>
    %c64_i32_8 = arith.constant 64 : i32
    %25 = tpu.dynamic_rotate %24 by %c64_i32_8 dim 1 : vector<16x128xf32>, i32 -> vector<16x128xf32>
    %26 = arith.addf %24, %25 : vector<16x128xf32>
    %27 = arith.divf %22, %26 : vector<16x128xf32>
    %28 = arith.mulf %27, %0 : vector<16x128xf32>
    %29 = vector.extract_strided_slice %2 {offsets = [0, 256], sizes = [16, 128], strides = [1, 1]} : vector<16x384xf32> to vector<16x128xf32>
    %c32_i32_9 = arith.constant 32 : i32
    %30 = tpu.dynamic_rotate %29 by %c32_i32_9 dim 1 : vector<16x128xf32>, i32 -> vector<16x128xf32>
    %31 = arith.maximumf %29, %30 : vector<16x128xf32>
    %c64_i32_10 = arith.constant 64 : i32
    %32 = tpu.dynamic_rotate %31 by %c64_i32_10 dim 1 : vector<16x128xf32>, i32 -> vector<16x128xf32>
    %33 = arith.maximumf %31, %32 : vector<16x128xf32>
    %34 = arith.subf %29, %33 : vector<16x128xf32>
    %35 = math.exp %34 : vector<16x128xf32>
    %c32_i32_11 = arith.constant 32 : i32
    %36 = tpu.dynamic_rotate %35 by %c32_i32_11 dim 1 : vector<16x128xf32>, i32 -> vector<16x128xf32>
    %37 = arith.addf %35, %36 : vector<16x128xf32>
    %c64_i32_12 = arith.constant 64 : i32
    %38 = tpu.dynamic_rotate %37 by %c64_i32_12 dim 1 : vector<16x128xf32>, i32 -> vector<16x128xf32>
    %39 = arith.addf %37, %38 : vector<16x128xf32>
    %40 = arith.divf %35, %39 : vector<16x128xf32>
    %41 = arith.mulf %40, %0 : vector<16x128xf32>
    %42 = tpu.concatenate %15, %28, %41 in 1 : vector<16x128xf32>, vector<16x128xf32>, vector<16x128xf32> -> vector<16x384xf32>
    %c0_13 = arith.constant 0 : index
    %c0_14 = arith.constant 0 : index
    %43 = vector.load %arg3[%c0_13, %c0_14] : memref<384x3xf32, #tpu.memory_space<vmem>>, vector<384x3xf32>
    %cst_15 = arith.constant dense<0.000000e+00> : vector<16x3xf32>
    %44 = tpu.matmul %42, %43, %cst_15 {dimension_numbers = #tpu.dot_dimension_numbers<[1], [0], [0], [1], [0, 0, 1, 1], [], []>} : vector<16x384xf32>, vector<384x3xf32>, vector<16x3xf32> -> vector<16x3xf32>
    %c0_16 = arith.constant 0 : index
    %c0_17 = arith.constant 0 : index
    %45 = vector.load %arg4[%c0_16, %c0_17] : memref<16x3xf32, #tpu.memory_space<vmem>>, vector<16x3xf32>
    tpu.vector_store %arg4[%c0_16, %c0_17], %44 {strides = array<i32>} : memref<16x3xf32, #tpu.memory_space<vmem>>, vector<16x3xf32>,
    return
  }
  func.func @transform_0(%arg0: i32) -> (i32, i32) {
    %c0_i32 = arith.constant 0 : i32
    %c0_i32_0 = arith.constant 0 : i32
    return %arg0, %c0_i32 : i32, i32
  }
  func.func @transform_1(%arg0: i32) -> (i32, i32) {
    %c0_i32 = arith.constant 0 : i32
    %c0_i32_0 = arith.constant 0 : i32
    %c0_i32_1 = arith.constant 0 : i32
    return %c0_i32, %c0_i32_0 : i32, i32
  }
  func.func @transform_2(%arg0: i32) -> (i32, i32) {
    %c0_i32 = arith.constant 0 : i32
    %c0_i32_0 = arith.constant 0 : i32
    %c0_i32_1 = arith.constant 0 : i32
    return %c0_i32, %c0_i32_0 : i32, i32
  }
  func.func @transform_3(%arg0: i32) -> (i32, i32) {
    %c0_i32 = arith.constant 0 : i32
    %c0_i32_0 = arith.constant 0 : i32
    return %arg0, %c0_i32 : i32, i32
  }
}

</mosaic_0001>

<bundles_post_ra>
// kernel: squeeze.3
= control target key start
LH: loop header
LB: loop body
LE: loop exit
PB: predicated region body
PF: predicated region fallthrough
CT: control target
= control target key end

     0   :  { %s77_s0 = inlined_call_operand.vmem [shape: f32[16], index: 0, kind: input, shape index: {}]   ;;  %s78_s1 = inlined_call_operand.hbm [shape: f32[2,8], index: 1, kind: output, shape index: {}]  }
   0x1   :  { %v6_v0 = vld [vmem:[%s77_s0] sm:$0x1] }
   0x2   :  { %2 = vsyncpa [#allocation1], 0  ;;  %7 = vst [vmem:[#allocation3] sm:$0x1] %v6_v0  ;;  %vm9_vm0 = vcmask 64512   ;;  %s59_s0 = smov 120  }
   0x3   :  { %s60_s8 = smov [#allocation0]  }
   0x4   :  { %s29_s9 = sshll.u32 %s60_s8, 4  ;;  %s30_s9 = int_to_ptr.vmem [resolvable:$true] %s29_s9 }
   0x5   :  { %s37_s10 = scalar_lea.vmem %s30_s9, 32  ;;  %p42_p1 = scmp.lt.s32.totalorder %s30_s9, %s30_s9 }
   0x6   :  { %p38_p0 = scmp.ne.s32.totalorder %s30_s9, %s37_s10  ;;  %p43_p2 = scmp.lt.s32.totalorder %s37_s10, %s37_s10 }
   0x8   :  { %p44_p3 = por %p43_p2, %p42_p1 }
   0x9   :  { %v11_v1 = vld [vmem:[#allocation3] sm:$0x1]  }
   0xa   :  { %v8_v2 = vld [vmem:[#allocation3] sm:$0x1]   ;;  %12 = vrot.lane.b32.xlu0 %v11_v1, %s59_s0  ;;  %p45_p4 = pnand %p44_p3, %p38_p0 }
   0xb   :  { %10 = vst.msk [vmem:[#allocation2] sm:$0x1] %vm9_vm0, %v8_v2  }
  0x7c   :  { %v13_v3 = vpop.permute.xlu0 %12  }
  0x7d   :  { %16 = vst.msk [vmem:[#allocation2 + $0x1] sm:$0x1] %vm9_vm0, %v13_v3  }
  0x84   :  { %v21_v4 = vld [vmem:[#allocation2] sm:$0x3] }
  0x85   :  { %24 = vst [vmem:[#allocation0] sm:$0x3] %v21_v4 }
  0x86   :  { %48 = shalt.err (!%p45_p4)
}
  0x87   :  { %32 = dma.vmem_to_hbm [thread:$0]  %s30_s9, 32, %s78_s1, [#allocation1]  }
  0x88   :  { %57 = dma.done.wait [#allocation1], 32  }
  0x89   :  { %58 = vsyncadd [#allocation1], 4294967264 }
  0x8a   :  { %34 = vsyncpa [#allocation1], 1 }

// kernel: vert_transformer_forward.1
= control target key start
LH: loop header
LB: loop body
LE: loop exit
PB: predicated region body
PF: predicated region fallthrough
CT: control target
= control target key end

     0   :  { %v700_v3 = vmov 0.0   ;;  %vm522_vm0 = vcmask 23552   ;;  %s1097_s1 = inlined_call_operand.vmem [shape: f32[128,384], index: 1, kind: input, shape index: {}]   ;;  %s1098_s0 = inlined_call_operand.vmem [shape: f32[16,128], index: 0, kind: input, shape index: {}]   ;;  %s1099_s2 = inlined_call_operand.vmem [shape: f32[384,3], index: 2, kind: input, shape index: {}]   ;;  %s1100_s3 = inlined_call_operand.vmem [shape: f32[16,3], index: 3, kind: output, shape index: {}]  }
   0x1   :  { %v62_v0 = vld [vmem:[%s1097_s1 + $0x170] sm:$0xff]  ;;  %v61_v1 = vld [vmem:[%s1097_s1 + $0x168] sm:$0xff]  ;;  %v59_v2 = vld [vmem:[%s1097_s1 + $0x158] sm:$0xff]  ;;  %128 = vmatprep.mubr.f32.mxu0 %v700_v3 }
   0x2   :  { %64 = vmatprep.subr.mxu0 %v62_v0  ;;  %v58_v4 = vld [vmem:[%s1097_s1 + $0x150] sm:$0xff]  ;;  %v56_v5 = vld [vmem:[%s1097_s1 + $0x140] sm:$0xff]  ;;  %v55_v6 = vld [vmem:[%s1097_s1 + $0x138] sm:$0xff] }
   0x3   :  { %65 = vmatpush1.msra.mxu0 %v61_v1  ;;  %v63_v7 = vld [vmem:[%s1097_s1 + $0x178] sm:$0xff]  ;;  %v53_v8 = vld [vmem:[%s1097_s1 + $0x128] sm:$0xff]  ;;  %v60_v9 = vld [vmem:[%s1097_s1 + $0x160] sm:$0xff] }
   0x4   :  { %66 = vmatprep.subr.mxu0 %v59_v2  ;;  %603 = vmatprep.subr.mxu1 %v63_v7  ;;  %v52_v10 = vld [vmem:[%s1097_s1 + $0x120] sm:$0xff]  ;;  %v57_v11 = vld [vmem:[%s1097_s1 + $0x148] sm:$0xff]  ;;  %v50_v12 = vld [vmem:[%s1097_s1 + $0x110] sm:$0xff] }
   0x5   :  { %67 = vmatpush1.msra.mxu0 %v58_v4  ;;  %604 = vmatpush3.msra.mxu1 %v63_v7  ;;  %v49_v13 = vld [vmem:[%s1097_s1 + $0x108] sm:$0xff]  ;;  %v54_v14 = vld [vmem:[%s1097_s1 + $0x130] sm:$0xff]  ;;  %v47_v15 = vld [vmem:[%s1097_s1 + $0xf8] sm:$0xff] }
   0x6   :  { %68 = vmatprep.subr.mxu0 %v56_v5  ;;  %605 = vmatprep.subr.mxu1 %v60_v9  ;;  %v46_v16 = vld [vmem:[%s1097_s1 + $0xf0] sm:$0xff]  ;;  %v51_v17 = vld [vmem:[%s1097_s1 + $0x118] sm:$0xff]  ;;  %v44_v18 = vld [vmem:[%s1097_s1 + $0xe0] sm:$0xff] }
   0x7   :  { %69 = vmatpush1.msra.mxu0 %v55_v6  ;;  %606 = vmatpush3.msra.mxu1 %v60_v9  ;;  %v43_v19 = vld [vmem:[%s1097_s1 + $0xd8] sm:$0xff]  ;;  %v48_v20 = vld [vmem:[%s1097_s1 + $0x100] sm:$0xff]  ;;  %v41_v21 = vld [vmem:[%s1097_s1 + $0xc8] sm:$0xff] }
   0x8   :  { %70 = vmatprep.subr.mxu0 %v53_v8  ;;  %607 = vmatprep.subr.mxu1 %v57_v11  ;;  %v40_v22 = vld [vmem:[%s1097_s1 + $0xc0] sm:$0xff]  ;;  %v45_v23 = vld [vmem:[%s1097_s1 + $0xe8] sm:$0xff]  ;;  %v38_v24 = vld [vmem:[%s1097_s1 + $0xb0] sm:$0xff] }
   0x9   :  { %71 = vmatpush1.msra.mxu0 %v52_v10  ;;  %608 = vmatpush3.msra.mxu1 %v57_v11  ;;  %v37_v25 = vld [vmem:[%s1097_s1 + $0xa8] sm:$0xff]  ;;  %v42_v26 = vld [vmem:[%s1097_s1 + $0xd0] sm:$0xff]  ;;  %v35_v27 = vld [vmem:[%s1097_s1 + $0x98] sm:$0xff] }
   0xa   :  { %72 = vmatprep.subr.mxu0 %v50_v12  ;;  %609 = vmatprep.subr.mxu1 %v54_v14  ;;  %v34_v28 = vld [vmem:[%s1097_s1 + $0x90] sm:$0xff]  ;;  %v39_v29 = vld [vmem:[%s1097_s1 + $0xb8] sm:$0xff]  ;;  %v32_v30 = vld [vmem:[%s1097_s1 + $0x80] sm:$0xff] }
   0xb   :  { %73 = vmatpush1.msra.mxu0 %v49_v13  ;;  %610 = vmatpush3.msra.mxu1 %v54_v14  ;;  %v31_v31 = vld [vmem:[%s1097_s1 + $0x78] sm:$0xff]  ;;  %v36_v32 = vld [vmem:[%s1097_s1 + $0xa0] sm:$0xff]  ;;  %v29_v33 = vld [vmem:[%s1097_s1 + $0x68] sm:$0xff] }
   0xc   :  { %74 = vmatprep.subr.mxu0 %v47_v15  ;;  %611 = vmatprep.subr.mxu1 %v51_v17  ;;  %v28_v34 = vld [vmem:[%s1097_s1 + $0x60] sm:$0xff]  ;;  %v33_v35 = vld [vmem:[%s1097_s1 + $0x88] sm:$0xff]  ;;  %v26_v36 = vld [vmem:[%s1097_s1 + $0x50] sm:$0xff] }
   0xd   :  { %75 = vmatpush1.msra.mxu0 %v46_v16  ;;  %612 = vmatpush3.msra.mxu1 %v51_v17  ;;  %v25_v37 = vld [vmem:[%s1097_s1 + $0x48] sm:$0xff]  ;;  %v30_v38 = vld [vmem:[%s1097_s1 + $0x70] sm:$0xff]  ;;  %v23_v39 = vld [vmem:[%s1097_s1 + $0x38] sm:$0xff] }
   0xe   :  { %76 = vmatprep.subr.mxu0 %v44_v18  ;;  %613 = vmatprep.subr.mxu1 %v48_v20  ;;  %v22_v40 = vld [vmem:[%s1097_s1 + $0x30] sm:$0xff]  ;;  %v27_v41 = vld [vmem:[%s1097_s1 + $0x58] sm:$0xff]  ;;  %v20_v42 = vld [vmem:[%s1097_s1 + $0x20] sm:$0xff] }
   0xf   :  { %77 = vmatpush1.msra.mxu0 %v43_v19  ;;  %614 = vmatpush3.msra.mxu1 %v48_v20  ;;  %v19_v43 = vld [vmem:[%s1097_s1 + $0x18] sm:$0xff]  ;;  %v24_v44 = vld [vmem:[%s1097_s1 + $0x40] sm:$0xff]  ;;  %v17_v45 = vld [vmem:[%s1097_s1 + $0x8] sm:$0xff] }
  0x10   :  { %78 = vmatprep.subr.mxu0 %v41_v21  ;;  %615 = vmatprep.subr.mxu1 %v45_v23  ;;  %v16_v46 = vld [vmem:[%s1097_s1] sm:$0xff]  ;;  %v21_v47 = vld [vmem:[%s1097_s1 + $0x28] sm:$0xff]  ;;  %v18_v49 = vld [vmem:[%s1097_s1 + $0x10] sm:$0xff]  ;;  %s701_s1 = smov 32  }
  0x11   :  { %79 = vmatpush1.msra.mxu0 %v40_v22  ;;  %616 = vmatpush3.msra.mxu1 %v45_v23  ;;  %v868_v48 = vld [vmem:[%s1098_s0] sm:$0xff]  ;;  %v878_v50 = vld [vmem:[%s1098_s0 + $0x8] sm:$0xff]  ;;  %s702_s0 = smov 64  }
  0x12   :  { %80 = vmatprep.subr.mxu0 %v38_v24  ;;  %617 = vmatprep.subr.mxu1 %v42_v26 }
  0x13   :  { %81 = vmatpush1.msra.mxu0 %v37_v25  ;;  %618 = vmatpush3.msra.mxu1 %v42_v26 }
  0x14   :  { %82 = vmatprep.subr.mxu0 %v35_v27  ;;  %619 = vmatprep.subr.mxu1 %v39_v29 }
  0x15   :  { %83 = vmatpush1.msra.mxu0 %v34_v28  ;;  %620 = vmatpush3.msra.mxu1 %v39_v29 }
  0x16   :  { %84 = vmatprep.subr.mxu0 %v32_v30  ;;  %621 = vmatprep.subr.mxu1 %v36_v32  ;;  %v355_v30 = vld [vmem:[%s1099_s2 + $0xf8] sm:$0xff] }
  0x17   :  { %85 = vmatpush1.msra.mxu0 %v31_v31  ;;  %622 = vmatpush3.msra.mxu1 %v36_v32  ;;  %v339_v31 = vld [vmem:[%s1099_s2 + $0x78] sm:$0xff]  ;;  %v354_v32 = vld [vmem:[%s1099_s2 + $0xf0] sm:$0xff] }
  0x18   :  { %86 = vmatprep.subr.mxu0 %v29_v33  ;;  %623 = vmatprep.subr.mxu1 %v33_v35 }
  0x19   :  { %87 = vmatpush1.msra.mxu0 %v28_v34  ;;  %624 = vmatpush3.msra.mxu1 %v33_v35  ;;  %v338_v34 = vld [vmem:[%s1099_s2 + $0x70] sm:$0xff]  ;;  %v353_v35 = vld [vmem:[%s1099_s2 + $0xe8] sm:$0xff] }
  0x1a   :  { %88 = vmatprep.subr.mxu0 %v26_v36  ;;  %625 = vmatprep.subr.mxu1 %v30_v38 }
  0x1b   :  { %89 = vmatpush1.msra.mxu0 %v25_v37  ;;  %626 = vmatpush3.msra.mxu1 %v30_v38  ;;  %v337_v37 = vld [vmem:[%s1099_s2 + $0x68] sm:$0xff]  ;;  %v352_v38 = vld [vmem:[%s1099_s2 + $0xe0] sm:$0xff] }
  0x1c   :  { %90 = vmatprep.subr.mxu0 %v23_v39  ;;  %627 = vmatprep.subr.mxu1 %v27_v41 }
  0x1d   :  { %91 = vmatpush1.msra.mxu0 %v22_v40  ;;  %628 = vmatpush3.msra.mxu1 %v27_v41  ;;  %v336_v40 = vld [vmem:[%s1099_s2 + $0x60] sm:$0xff] }
  0x1e   :  { %92 = vmatprep.subr.mxu0 %v20_v42  ;;  %629 = vmatprep.subr.mxu1 %v24_v44 }
  0x1f   :  { %93 = vmatpush1.msra.mxu0 %v19_v43  ;;  %630 = vmatpush3.msra.mxu1 %v24_v44  ;;  %v351_v43 = vld [vmem:[%s1099_s2 + $0xd8] sm:$0xff] }
  0x20   :  { %94 = vmatprep.subr.mxu0 %v17_v45  ;;  %631 = vmatprep.subr.mxu1 %v21_v47  ;;  %v371_v44 = vld [vmem:[%s1099_s2 + $0x178] sm:$0xff] }
  0x21   :  { %95 = vmatpush1.msra.mxu0 %v16_v46  ;;  %632 = vmatpush3.msra.mxu1 %v21_v47  ;;  %v335_v45 = vld [vmem:[%s1099_s2 + $0x58] sm:$0xff]  ;;  %v350_v46 = vld [vmem:[%s1099_s2 + $0xd0] sm:$0xff] }
  0x22   :  { %129 = vmatmul.mubr.f32.vlgmr.msra.gmra.mxu0 %v868_v48  ;;  %633 = vmatprep.subr.mxu1 %v18_v49  ;;  %v370_v47 = vld [vmem:[%s1099_s2 + $0x170] sm:$0xff] }
  0x23   :  { %134 = vmatprep.mubr.f32.mxu0 %v700_v3  ;;  %634 = vmatpush3.msra.mxu1 %v18_v49  ;;  %v334_v49 = vld [vmem:[%s1099_s2 + $0x50] sm:$0xff] }
  0x24   :  { %635 = vmatprep.mubr.f32.mxu1 %v868_v48  ;;  %547 = vmatprep.subr.mxu0 %v355_v30  ;;  %v359_v30 = vld [vmem:[%s1099_s2 + $0x118] sm:$0xff] }
  0x25   :  { %636 = vmatmul.mubr.f32.vlgmr.msra.gmra.mxu1 %v878_v50  ;;  %548 = vmatpush3.msra.mxu0 %v339_v31  ;;  %v358_v31 = vld [vmem:[%s1099_s2 + $0x110] sm:$0xff] }
  0x26   :  { %135 = vmatmul.mubr.f32.gmra.mxu0 %v878_v50  ;;  %549 = vmatprep.subr.mxu0 %v354_v32  ;;  %v357_v32 = vld [vmem:[%s1099_s2 + $0x108] sm:$0xff] }
  0x27   :  { %550 = vmatpush3.msra.mxu0 %v338_v34  ;;  %638 = vmatprep.subr.mxu1 %v371_v44  ;;  %v356_v34 = vld [vmem:[%s1099_s2 + $0x100] sm:$0xff] }
  0x28   :  { %551 = vmatprep.subr.mxu0 %v353_v35  ;;  %639 = vmatpush3.msra.mxu1 %v371_v44 }
  0x29   :  { %552 = vmatpush3.msra.mxu0 %v337_v37  ;;  %640 = vmatprep.subr.mxu1 %v370_v47 }
  0x2a   :  { %553 = vmatprep.subr.mxu0 %v352_v38  ;;  %641 = vmatpush3.msra.mxu1 %v370_v47 }
  0x2b   :  { %554 = vmatpush3.msra.mxu0 %v336_v40 }
  0x2c   :  { %555 = vmatprep.subr.mxu0 %v351_v43 }
  0x2d   :  { %556 = vmatpush3.msra.mxu0 %v335_v45 }
  0x2e   :  { %557 = vmatprep.subr.mxu0 %v350_v46 }
  0x2f   :  { %558 = vmatpush3.msra.mxu0 %v334_v49 }
  0xe2   :  { %v130_v51 = vpop.f32.mrf.mxu0 }
  0xe4   :  { %v132_v52 = vpop.f32.mrf.mxu0 }
  0xe5   :  { %252 = vrot.lane.b32.xlu0 %v132_v52, %s701_s1  ;;  %v637_v54 = vpop.f32.mrf.mxu1 }
  0xe6   :  { %v136_v53 = vpop.f32.mrf.mxu0 }
  0xe7   :  { %218 = vrot.lane.b32.xlu1 %v136_v53, %s701_s1  ;;  %v207_v56 = vpop.f32.mrf.mxu1 }
  0xe8   :  { %v138_v55 = vpop.f32.mrf.mxu0 }
  0xe9   :  { %216 = vrot.lane.b32.xlu0 %v130_v51, %s701_s1 }
  0xeb   :  { %254 = vrot.lane.b32.xlu1 %v138_v55, %s701_s1 }
  0xed   :  { %288 = vrot.lane.b32.xlu0 %v207_v56, %s701_s1 }
  0xef   :  { %290 = vrot.lane.b32.xlu1 %v637_v54, %s701_s1 }
 0x157   :  { %v253_v57 = vpop.permute.xlu0 %252 }
 0x158   :  { %v256_v58 = vmax.f32 %v132_v52, %v253_v57  ;;  %v347_v57 = vld [vmem:[%s1099_s2 + $0xb8] sm:$0xff] }
 0x159   :  { %v219_v59 = vpop.permute.xlu1 %218 }
 0x15a   :  { %258 = vrot.lane.b32.xlu0 %v256_v58, %s702_s0  ;;  %v221_v1 = vmax.f32 %v136_v53, %v219_v59  ;;  %v331_v59 = vld [vmem:[%s1099_s2 + $0x38] sm:$0xff] }
 0x15b   :  { %v217_v60 = vpop.permute.xlu0 %216 }
 0x15c   :  { %v220_v61 = vmax.f32 %v130_v51, %v217_v60  ;;  %v346_v60 = vld [vmem:[%s1099_s2 + $0xb0] sm:$0xff] }
 0x15d   :  { %v255_v62 = vpop.permute.xlu1 %254 }
 0x15e   :  { %v257_v63 = vmax.f32 %v138_v55, %v255_v62  ;;  %222 = vrot.lane.b32.xlu1 %v220_v61, %s702_s0 }
 0x15f   :  { %v289_v0 = vpop.permute.xlu0 %288 }
 0x160   :  { %260 = vrot.lane.b32.xlu0 %v257_v63, %s702_s0  ;;  %v292_v3 = vmax.f32 %v207_v56, %v289_v0 }
 0x161   :  { %v291_v2 = vpop.permute.xlu1 %290 }
 0x162   :  { %224 = vrot.lane.b32.xlu1 %v221_v1, %s702_s0  ;;  %v293_v4 = vmax.f32 %v637_v54, %v291_v2  ;;  %v365_v2 = vld [vmem:[%s1099_s2 + $0x148] sm:$0xff] }
 0x164   :  { %294 = vrot.lane.b32.xlu0 %v292_v3, %s702_s0 }
 0x166   :  { %296 = vrot.lane.b32.xlu1 %v293_v4, %s702_s0 }
 0x1cc   :  { %v259_v5 = vpop.permute.xlu0 %258 }
 0x1cd   :  { %v262_v6 = vmax.f32 %v256_v58, %v259_v5  ;;  %v367_v58 = vld [vmem:[%s1099_s2 + $0x158] sm:$0xff]  ;;  %v364_v5 = vld [vmem:[%s1099_s2 + $0x140] sm:$0xff] }
 0x1cf   :  { %v264_v7 = vsub.f32 %v132_v52, %v262_v6  ;;  %v369_v52 = vld [vmem:[%s1099_s2 + $0x168] sm:$0xff] }
 0x1d0   :  { %v223_v8 = vpop.permute.xlu1 %222  ;;  %642 = vmatprep.subr.mxu1 %v369_v52 }
 0x1d1   :  { %v266_v9 = vmul.f32 1.442695, %v264_v7  ;;  %v226_v10 = vmax.f32 %v220_v61, %v223_v8  ;;  %643 = vmatpush3.msra.mxu1 %v369_v52  ;;  %v366_v61 = vld [vmem:[%s1099_s2 + $0x150] sm:$0xff]  ;;  %v328_v7 = vld [vmem:[%s1099_s2 + $0x20] sm:$0xff]  ;;  %v343_v8 = vld [vmem:[%s1099_s2 + $0x98] sm:$0xff] }
 0x1d2   :  { %v261_v11 = vpop.permute.xlu0 %260 }
 0x1d3   :  { %676 = vpow2.f32 %v266_v9  ;;  %v228_v12 = vsub.f32 %v130_v51, %v226_v10  ;;  %v263_v13 = vmax.f32 %v257_v63, %v261_v11  ;;  %v349_v51 = vld [vmem:[%s1099_s2 + $0xc8] sm:$0xff]  ;;  %v330_v63 = vld [vmem:[%s1099_s2 + $0x30] sm:$0xff]  ;;  %v363_v9 = vld [vmem:[%s1099_s2 + $0x138] sm:$0xff] }
 0x1d4   :  { %v225_v14 = vpop.permute.xlu1 %224  ;;  %559 = vmatprep.subr.mxu0 %v349_v51  ;;  %v327_v11 = vld [vmem:[%s1099_s2 + $0x18] sm:$0xff] }
 0x1d5   :  { %v230_v15 = vmul.f32 1.442695, %v228_v12  ;;  %v265_v16 = vsub.f32 %v138_v55, %v263_v13  ;;  %v227_v17 = vmax.f32 %v221_v1, %v225_v14  ;;  %v368_v55 = vld [vmem:[%s1099_s2 + $0x160] sm:$0xff]  ;;  %v345_v1 = vld [vmem:[%s1099_s2 + $0xa8] sm:$0xff]  ;;  %v342_v13 = vld [vmem:[%s1099_s2 + $0x90] sm:$0xff] }
 0x1d6   :  { %v295_v18 = vpop.permute.xlu0 %294  ;;  %644 = vmatprep.subr.mxu1 %v368_v55 }
 0x1d7   :  { %678 = vpow2.f32 %v230_v15  ;;  %v268_v19 = vmul.f32 1.442695, %v265_v16  ;;  %v229_v20 = vsub.f32 %v136_v53, %v227_v17  ;;  %v298_v21 = vmax.f32 %v292_v3, %v295_v18  ;;  %v333_v53 = vld [vmem:[%s1099_s2 + $0x48] sm:$0xff]  ;;  %645 = vmatpush3.msra.mxu1 %v368_v55  ;;  %v362_v15 = vld [vmem:[%s1099_s2 + $0x130] sm:$0xff] }
 0x1d8   :  { %v297_v22 = vpop.permute.xlu1 %296  ;;  %560 = vmatpush3.msra.mxu0 %v333_v53  ;;  %646 = vmatprep.subr.mxu1 %v367_v58  ;;  %v329_v3 = vld [vmem:[%s1099_s2 + $0x28] sm:$0xff]  ;;  %v326_v16 = vld [vmem:[%s1099_s2 + $0x10] sm:$0xff] }
 0x1d9   :  { %680 = vpow2.f32 %v268_v19  ;;  %v232_v23 = vmul.f32 1.442695, %v229_v20  ;;  %v300_v24 = vsub.f32 %v207_v56, %v298_v21  ;;  %v299_v25 = vmax.f32 %v293_v4, %v297_v22  ;;  %v332_v56 = vld [vmem:[%s1099_s2 + $0x40] sm:$0xff]  ;;  %647 = vmatpush3.msra.mxu1 %v367_v58  ;;  %v341_v19 = vld [vmem:[%s1099_s2 + $0x88] sm:$0xff] }
 0x1da   :  { %648 = vmatprep.subr.mxu1 %v366_v61  ;;  %v344_v4 = vld [vmem:[%s1099_s2 + $0xa0] sm:$0xff]  ;;  %v361_v20 = vld [vmem:[%s1099_s2 + $0x128] sm:$0xff] }
 0x1db   :  { %682 = vpow2.f32 %v232_v23  ;;  %v302_v26 = vmul.f32 1.442695, %v300_v24  ;;  %v301_v27 = vsub.f32 %v637_v54, %v299_v25  ;;  %v348_v54 = vld [vmem:[%s1099_s2 + $0xc0] sm:$0xff]  ;;  %649 = vmatpush3.msra.mxu1 %v366_v61  ;;  %v325_v22 = vld [vmem:[%s1099_s2 + $0x8] sm:$0xff] }
 0x1dc   :  { %561 = vmatprep.subr.mxu0 %v348_v54  ;;  %650 = vmatprep.subr.mxu1 %v365_v2  ;;  %v340_v24 = vld [vmem:[%s1099_s2 + $0x80] sm:$0xff] }
 0x1dd   :  { %684 = vpow2.f32 %v302_v26  ;;  %v304_v28 = vmul.f32 1.442695, %v301_v27  ;;  %562 = vmatpush3.msra.mxu0 %v332_v56  ;;  %651 = vmatpush3.msra.mxu1 %v365_v2  ;;  %v360_v26 = vld [vmem:[%s1099_s2 + $0x120] sm:$0xff] }
 0x1de   :  { %563 = vmatprep.subr.mxu0 %v347_v57  ;;  %652 = vmatprep.subr.mxu1 %v364_v5 }
 0x1df   :  { %686 = vpow2.f32 %v304_v28  ;;  %564 = vmatpush3.msra.mxu0 %v331_v59  ;;  %653 = vmatpush3.msra.mxu1 %v364_v5  ;;  %v324_v28 = vld [vmem:[%s1099_s2] sm:$0xff] }
 0x1e0   :  { %v895_v29 = vpop.eup %676  ;;  %565 = vmatprep.subr.mxu0 %v346_v60  ;;  %654 = vmatprep.subr.mxu1 %v363_v9 }
 0x1e1   :  { %270 = vrot.lane.b32.xlu0 %v895_v29, %s701_s1  ;;  %566 = vmatpush3.msra.mxu0 %v330_v63 }
 0x1e2   :  { %567 = vmatprep.subr.mxu0 %v345_v1  ;;  %655 = vmatpush3.msra.mxu1 %v363_v9 }
 0x1e3   :  { %568 = vmatpush3.msra.mxu0 %v329_v3  ;;  %656 = vmatprep.subr.mxu1 %v362_v15 }
 0x1e4   :  { %v908_v33 = vpop.eup %678  ;;  %569 = vmatprep.subr.mxu0 %v344_v4  ;;  %657 = vmatpush3.msra.mxu1 %v362_v15 }
 0x1e5   :  { %234 = vrot.lane.b32.xlu1 %v908_v33, %s701_s1  ;;  %570 = vmatpush3.msra.mxu0 %v328_v7 }
 0x1e6   :  { %v918_v36 = vpop.eup %680  ;;  %571 = vmatprep.subr.mxu0 %v343_v8  ;;  %658 = vmatprep.subr.mxu1 %v361_v20 }
 0x1e7   :  { %272 = vrot.lane.b32.xlu0 %v918_v36, %s701_s1  ;;  %572 = vmatpush3.msra.mxu0 %v327_v11 }
 0x1e8   :  { %v928_v39 = vpop.eup %682  ;;  %573 = vmatprep.subr.mxu0 %v342_v13  ;;  %659 = vmatpush3.msra.mxu1 %v361_v20 }
 0x1e9   :  { %236 = vrot.lane.b32.xlu1 %v928_v39, %s701_s1  ;;  %574 = vmatpush3.msra.mxu0 %v326_v16 }
 0x1ea   :  { %v935_v41 = vpop.eup %684  ;;  %575 = vmatprep.subr.mxu0 %v341_v19  ;;  %660 = vmatprep.subr.mxu1 %v360_v26 }
 0x1eb   :  { %306 = vrot.lane.b32.xlu0 %v935_v41, %s701_s1  ;;  %576 = vmatpush3.msra.mxu0 %v325_v22 }
 0x1ec   :  { %v939_v42 = vpop.eup %686  ;;  %577 = vmatprep.subr.mxu0 %v340_v24  ;;  %661 = vmatpush3.msra.mxu1 %v360_v26 }
 0x1ed   :  { %308 = vrot.lane.b32.xlu1 %v939_v42, %s701_s1  ;;  %578 = vmatpush3.msra.mxu0 %v324_v28 }
 0x1ee   :  { %662 = vmatprep.subr.mxu1 %v359_v30 }
 0x1ef   :  { %663 = vmatpush3.msra.mxu1 %v359_v30 }
 0x1f0   :  { %664 = vmatprep.subr.mxu1 %v358_v31 }
 0x1f1   :  { %665 = vmatpush3.msra.mxu1 %v358_v31 }
 0x1f2   :  { %666 = vmatprep.subr.mxu1 %v357_v32 }
 0x1f3   :  { %667 = vmatpush3.msra.mxu1 %v357_v32 }
 0x1f4   :  { %668 = vmatprep.subr.mxu1 %v356_v34 }
 0x1f5   :  { %669 = vmatpush3.msra.mxu1 %v356_v34 }
 0x253   :  { %v271_v62 = vpop.permute.xlu0 %270 }
 0x254   :  { %v998_v0 = vadd.f32 %v895_v29, %v271_v62 }
 0x256   :  { %276 = vrot.lane.b32.xlu0 %v998_v0, %s702_s0 }
 0x257   :  { %v235_v6 = vpop.permute.xlu1 %234 }
 0x258   :  { %v238_v10 = vadd.f32 %v908_v33, %v235_v6 }
 0x259   :  { %v273_v12 = vpop.permute.xlu0 %272 }
 0x25a   :  { %v275_v14 = vadd.f32 %v918_v36, %v273_v12  ;;  %240 = vrot.lane.b32.xlu1 %v238_v10, %s702_s0 }
 0x25b   :  { %v237_v17 = vpop.permute.xlu1 %236 }
 0x25c   :  { %v239_v18 = vadd.f32 %v928_v39, %v237_v17  ;;  %278 = vrot.lane.b32.xlu0 %v275_v14, %s702_s0 }
 0x25d   :  { %v307_v21 = vpop.permute.xlu0 %306 }
 0x25e   :  { %v310_v23 = vadd.f32 %v935_v41, %v307_v21  ;;  %242 = vrot.lane.b32.xlu1 %v239_v18, %s702_s0 }
 0x25f   :  { %v309_v25 = vpop.permute.xlu1 %308 }
 0x260   :  { %v311_v27 = vadd.f32 %v939_v42, %v309_v25  ;;  %312 = vrot.lane.b32.xlu0 %v310_v23, %s702_s0 }
 0x262   :  { %314 = vrot.lane.b32.xlu1 %v311_v27, %s702_s0 }
 0x2c8   :  { %v277_v35 = vpop.permute.xlu0 %276 }
 0x2c9   :  { %v280_v37 = vadd.f32 %v277_v35, %v998_v0 }
 0x2cb   :  { %688 = vrcp.f32 %v280_v37 }
 0x2cc   :  { %v241_v38 = vpop.permute.xlu1 %240 }
 0x2cd   :  { %v244_v40 = vadd.f32 %v241_v38, %v238_v10 }
 0x2ce   :  { %v279_v43 = vpop.permute.xlu0 %278 }
 0x2cf   :  { %690 = vrcp.f32 %v244_v40  ;;  %v281_v44 = vadd.f32 %v279_v43, %v275_v14 }
 0x2d0   :  { %v243_v45 = vpop.permute.xlu1 %242 }
 0x2d1   :  { %692 = vrcp.f32 %v281_v44  ;;  %v245_v46 = vadd.f32 %v243_v45, %v239_v18 }
 0x2d2   :  { %v313_v47 = vpop.permute.xlu0 %312 }
 0x2d3   :  { %694 = vrcp.f32 %v245_v46  ;;  %v316_v49 = vadd.f32 %v313_v47, %v310_v23 }
 0x2d4   :  { %v315_v51 = vpop.permute.xlu1 %314 }
 0x2d5   :  { %696 = vrcp.f32 %v316_v49  ;;  %v317_v52 = vadd.f32 %v315_v51, %v311_v27 }
 0x2d7   :  { %698 = vrcp.f32 %v317_v52 }
 0x2d8   :  { %v689_v53 = vpop.eup %688 }
 0x2d9   :  { %v283_v54 = vmul.f32 %v689_v53, %v895_v29 }
 0x2db   :  { %v286_v55 = vmul.f32 %v283_v54, %v868_v48 }
 0x2dc   :  { %v691_v56 = vpop.eup %690 }
 0x2dd   :  { %436 = vmatprep.mubr.f32.mxu0 %v286_v55  ;;  %v247_v57 = vmul.f32 %v691_v56, %v908_v33 }
 0x2de   :  { %v693_v58 = vpop.eup %692 }
 0x2df   :  { %v250_v59 = vmul.f32 %v247_v57, %v868_v48  ;;  %v285_v60 = vmul.f32 %v693_v58, %v918_v36 }
 0x2e0   :  { %v695_v61 = vpop.eup %694 }
 0x2e1   :  { %437 = vmatmul.mubr.f32.vlgmr.msra.gmra.mxu0 %v250_v59  ;;  %v287_v62 = vmul.f32 %v285_v60, %v878_v50  ;;  %v249_v63 = vmul.f32 %v695_v61, %v928_v39 }
 0x2e2   :  { %v697_v0 = vpop.eup %696 }
 0x2e3   :  { %441 = vmatprep.mubr.f32.mxu0 %v287_v62  ;;  %v251_v29 = vmul.f32 %v249_v63, %v878_v50  ;;  %v319_v1 = vmul.f32 %v697_v0, %v935_v41 }
 0x2e4   :  { %v699_v2 = vpop.eup %698 }
 0x2e5   :  { %442 = vmatmul.mubr.f32.gmra.mxu0 %v251_v29  ;;  %v322_v33 = vmul.f32 %v319_v1, %v868_v48  ;;  %v321_v3 = vmul.f32 %v699_v2, %v939_v42 }
 0x2e7   :  { %670 = vmatprep.mubr.f32.mxu1 %v322_v33  ;;  %v323_v36 = vmul.f32 %v321_v3, %v878_v50 }
 0x2e9   :  { %671 = vmatmul.mubr.f32.vlgmr.msra.gmra.mxu1 %v323_v36 }
 0x3a1   :  { %v579_v4 = vpop.f32.mrf.mxu0 }
 0x3a3   :  { %v580_v5 = vpop.f32.mrf.mxu0 }
 0x3a4   :  { %v581_v9 = vadd.f32 %v580_v5, %v579_v4 }
 0x3a5   :  { %v582_v6 = vpop.f32.mrf.mxu0 }
 0x3a7   :  { %v583_v39 = vpop.f32.mrf.mxu0 }
 0x3a8   :  { %v584_v7 = vadd.f32 %v583_v39, %v582_v6 }
 0x3a9   :  { %v672_v8 = vpop.f32.mrf.mxu1 }
 0x3aa   :  { %v519_v10 = vadd.f32 %v672_v8, %v584_v7 }
 0x3ab   :  { %v513_v41 = vpop.f32.mrf.mxu1 }
 0x3ac   :  { %524 = vst.msk [vmem:[%s1100_s3 + $0x8] sm:$0xff] %vm522_vm0, %v519_v10  ;;  %v514_v48 = vadd.f32 %v581_v9, %v513_v41 }
 0x3ae   :  { %523 = vst.msk [vmem:[%s1100_s3] sm:$0xff] %vm522_vm0, %v514_v48 }

</bundles_post_ra>
